<compile_context>
chip_gen: v5e
topology: v5e:2x2
jax: 0.10.0
libtpu: 0.0.40
codegen_flags: <defaults>
</compile_context>

<pallas_src>
import functools

import jax
import jax.numpy as jnp
from jax import lax
from jax.experimental import pallas as pl
from jax.experimental.pallas import tpu as pltpu

_LN_EPS = 1e-5


def _layer_norm(v):
    """LayerNorm without affine params (matches nn.LayerNorm(..., elementwise_affine=False))."""
    mu = jnp.mean(v, axis=-1, keepdims=True)
    c = v - mu
    var = jnp.mean(c * c, axis=-1, keepdims=True)
    return c * lax.rsqrt(var + _LN_EPS)


def _block0_kernel(B, T, Dm, h,
                   x_ref, wq_ref, wk_ref, wv_ref, wo_ref, bo_ref,
                   w1_ref, b1_ref, w2_ref, b2_ref, out_ref):
    dk = Dm // h

    # Whole batch as one [B*T, Dm] slab (sublane-only reshape).
    x2 = x_ref[...].astype(jnp.float32).reshape(B * T, Dm)

    # ---- LayerNorm 1 ----
    xn = _layer_norm(x2)

    # ---- fused full-width QKV projections (all heads at once) ----
    q = jnp.dot(xn, wq_ref[...], preferred_element_type=jnp.float32)   # [B*T, Dm]
    k = jnp.dot(xn, wk_ref[...], preferred_element_type=jnp.float32)
    v = jnp.dot(xn, wv_ref[...], preferred_element_type=jnp.float32)
    q3 = q.reshape(B, T, Dm)
    k3 = k.reshape(B, T, Dm)
    v3 = v.reshape(B, T, Dm)

    # ---- causal mask, built once per kernel call ----
    row = lax.broadcasted_iota(jnp.int32, (T, T), 0)
    col = lax.broadcasted_iota(jnp.int32, (T, T), 1)
    causal = (row >= col)[None, :, :]                                   # [1, T, T]

    scale = float(dk) ** -0.5

    # ---- per-head attention, accumulated straight through W_o (no concat) ----
    acc = jnp.zeros((B * T, Dm), jnp.float32)
    for hh in range(h):                                                 # h is small & static
        sl = slice(hh * dk, (hh + 1) * dk)
        qh = q3[:, :, sl]                                               # [B, T, dk]
        kh = k3[:, :, sl]
        vh = v3[:, :, sl]
        # batched q @ k^T via dot_general (no explicit transpose)
        s = jnp.einsum('bqd,bkd->bqk', qh, kh,
                       preferred_element_type=jnp.float32) * scale      # [B, T, T]
        s = jnp.where(causal, s, -jnp.inf)
        s = s - jnp.max(s, axis=-1, keepdims=True)
        p = jnp.exp(s)
        denom = jnp.sum(p, axis=-1, keepdims=True)
        p = p * pl.reciprocal(denom, approx=True)                       # EUP, not VALU divide
        oh = jnp.einsum('bqk,bkd->bqd', p, vh,
                        preferred_element_type=jnp.float32)             # [B, T, dk]
        # accumulate output projection: sublane-aligned row-slice of W_o
        acc += jnp.dot(oh.reshape(B * T, dk), wo_ref[sl, :],
                       preferred_element_type=jnp.float32)              # [B*T, Dm]

    x1 = x2 + acc + bo_ref[0]                                           # residual 1 (+ W_o bias)

    # ---- LayerNorm 2 + FeedForward ----
    xn2 = _layer_norm(x1)
    hid = jnp.dot(xn2, w1_ref[...], preferred_element_type=jnp.float32) + b1_ref[0]
    hid = jnp.maximum(hid, 0.0)                                         # ReLU
    ffn = jnp.dot(hid, w2_ref[...], preferred_element_type=jnp.float32) + b2_ref[0]

    out_ref[...] = (x1 + ffn).reshape(B, T, Dm).astype(out_ref.dtype)   # residual 2


def block0_forward(x, params, *, h):
    """x: [B, T, Dm] float32. params: dict of weights in feature-last layout
    (i.e. the transpose of PyTorch Linear.weight)."""
    B, T, Dm = x.shape
    assert Dm % h == 0
    kernel = functools.partial(_block0_kernel, B, T, Dm, h)

    # Weight BlockSpecs have constant index maps; at demo size the default
    # double-buffering is negligible (single-buffer / manual copy only matters
    # for production-sized weights on v7x).
    w2d = lambda shp: pl.BlockSpec(shp, lambda i: (0, 0))

    return pl.pallas_call(
        kernel,
        out_shape=jax.ShapeDtypeStruct((B, T, Dm), x.dtype),
        grid=(1,),
        in_specs=[
            pl.BlockSpec((B, T, Dm), lambda i: (0, 0, 0)),   # x (whole batch, one step)
            w2d((Dm, Dm)),                                   # W_q (heads stacked on lanes)
            w2d((Dm, Dm)),                                   # W_k
            w2d((Dm, Dm)),                                   # W_v
            w2d((Dm, Dm)),                                   # W_o
            w2d((1, Dm)),                                    # b_o
            w2d((Dm, 4 * Dm)),                               # W_ffn1
            w2d((1, 4 * Dm)),                                # b_ffn1
            w2d((4 * Dm, Dm)),                               # W_ffn2
            w2d((1, Dm)),                                    # b_ffn2
        ],
        out_specs=pl.BlockSpec((B, T, Dm), lambda i: (0, 0, 0)),
        compiler_params=pltpu.CompilerParams(
            dimension_semantics=("arbitrary",)),
    )(x, params["wq"], params["wk"], params["wv"], params["wo"], params["bo"],
      params["w1"], params["b1"], params["w2"], params["b2"])


def _reference(x, params, *, h):
    """Pure-JAX reference of Block0.forward (dropout = identity)."""
    B, T, Dm = x.shape
    dk = Dm // h

    def ln(v):
        mu = jnp.mean(v, axis=-1, keepdims=True)
        c = v - mu
        var = jnp.mean(c * c, axis=-1, keepdims=True)
        return c / jnp.sqrt(var + _LN_EPS)

    xn = ln(x)
    mask = jnp.tril(jnp.ones((T, T), dtype=bool))
    heads = []
    for hh in range(h):
        sl = slice(hh * dk, (hh + 1) * dk)
        q = xn @ params["wq"][:, sl]
        k = xn @ params["wk"][:, sl]
        v = xn @ params["wv"][:, sl]
        s = (q @ jnp.swapaxes(k, -1, -2)) * dk ** -0.5
        s = jnp.where(mask, s, -jnp.inf)
        p = jax.nn.softmax(s, axis=-1)
        heads.append(p @ v)
    attn = jnp.concatenate(heads, axis=-1)
    x1 = x + (attn @ params["wo"] + params["bo"][0])
    xn2 = ln(x1)
    hid = jnp.maximum(xn2 @ params["w1"] + params["b1"][0], 0.0)
    return x1 + (hid @ params["w2"] + params["b2"][0])


if __name__ == "__main__":
    B, T, Dm, H = 2, 8, 32, 4  # dk = dv = Dm // H = 8

    key = jax.random.PRNGKey(0)
    ks = jax.random.split(key, 9)
    std = 0.05
    params = {
        "wq": jax.random.normal(ks[0], (Dm, Dm), jnp.float32) * std,
        "wk": jax.random.normal(ks[1], (Dm, Dm), jnp.float32) * std,
        "wv": jax.random.normal(ks[2], (Dm, Dm), jnp.float32) * std,
        "wo": jax.random.normal(ks[3], (Dm, Dm), jnp.float32) * std,
        "bo": jax.random.normal(ks[4], (1, Dm), jnp.float32) * std,
        "w1": jax.random.normal(ks[5], (Dm, 4 * Dm), jnp.float32) * std,
        "b1": jax.random.normal(ks[6], (1, 4 * Dm), jnp.float32) * std,
        "w2": jax.random.normal(ks[7], (4 * Dm, Dm), jnp.float32) * std,
        "b2": jnp.zeros((1, Dm), jnp.float32),
    }
    x = jax.random.normal(ks[8], (B, T, Dm), jnp.float32)

    out = jax.block_until_ready(block0_forward(x, params, h=H))
    ref = jax.block_until_ready(_reference(x, params, h=H))

    assert out.shape == (B, T, Dm)
    # tolerance accounts for the approximate (EUP) reciprocal in the softmax
    assert jnp.allclose(out, ref, atol=1e-3, rtol=1e-3), "mismatch vs reference"
    print("KERNEL_OK")
</pallas_src>

<mosaic_0001>
module attributes {stable_mosaic.version = 11 : i64} {
  func.func @_block0_kernel(%arg0: i32, %arg1: memref<2x8x32xf32, #tpu.memory_space<vmem>>, %arg2: memref<32x32xf32, #tpu.memory_space<vmem>>, %arg3: memref<32x32xf32, #tpu.memory_space<vmem>>, %arg4: memref<32x32xf32, #tpu.memory_space<vmem>>, %arg5: memref<32x32xf32, #tpu.memory_space<vmem>>, %arg6: memref<1x32xf32, #tpu.memory_space<vmem>>, %arg7: memref<32x128xf32, #tpu.memory_space<vmem>>, %arg8: memref<1x128xf32, #tpu.memory_space<vmem>>, %arg9: memref<128x32xf32, #tpu.memory_space<vmem>>, %arg10: memref<1x32xf32, #tpu.memory_space<vmem>>, %arg11: memref<2x8x32xf32, #tpu.memory_space<vmem>>) attributes {dimension_semantics = [#tpu.dimension_semantics<arbitrary>], iteration_bounds = array<i64: 1>, scalar_prefetch = 0 : i64, scratch_operands = 0 : i64, tpu.core_type = #tpu.core_type<tc>, window_params = [{pipeline_mode = #tpu.pipeline_mode<synchronous>, transform_indices = @transform_0, window_bounds = array<i64: 2, 8, 32>}, {pipeline_mode = #tpu.pipeline_mode<synchronous>, transform_indices = @transform_1, window_bounds = array<i64: 32, 32>}, {pipeline_mode = #tpu.pipeline_mode<synchronous>, transform_indices = @transform_2, window_bounds = array<i64: 32, 32>}, {pipeline_mode = #tpu.pipeline_mode<synchronous>, transform_indices = @transform_3, window_bounds = array<i64: 32, 32>}, {pipeline_mode = #tpu.pipeline_mode<synchronous>, transform_indices = @transform_4, window_bounds = array<i64: 32, 32>}, {pipeline_mode = #tpu.pipeline_mode<synchronous>, transform_indices = @transform_5, window_bounds = array<i64: 1, 32>}, {pipeline_mode = #tpu.pipeline_mode<synchronous>, transform_indices = @transform_6, window_bounds = array<i64: 32, 128>}, {pipeline_mode = #tpu.pipeline_mode<synchronous>, transform_indices = @transform_7, window_bounds = array<i64: 1, 128>}, {pipeline_mode = #tpu.pipeline_mode<synchronous>, transform_indices = @transform_8, window_bounds = array<i64: 128, 32>}, {pipeline_mode = #tpu.pipeline_mode<synchronous>, transform_indices = @transform_9, window_bounds = array<i64: 1, 32>}, {pipeline_mode = #tpu.pipeline_mode<synchronous>, transform_indices = @transform_10, window_bounds = array<i64: 2, 8, 32>}]} {
    %c0 = arith.constant 0 : index
    %c0_0 = arith.constant 0 : index
    %c0_1 = arith.constant 0 : index
    %0 = vector.load %arg1[%c0, %c0_0, %c0_1] : memref<2x8x32xf32, #tpu.memory_space<vmem>>, vector<2x8x32xf32>
    %1 = vector.shape_cast %0 : vector<2x8x32xf32> to vector<16x32xf32>
    %cst = arith.constant dense<0.000000e+00> : vector<16xf32>
    %2 = vector.multi_reduction <add>, %1, %cst [1] : vector<16x32xf32> to vector<16xf32>
    %3 = vector.shape_cast %2 : vector<16xf32> to vector<16x1xf32>
    %cst_2 = arith.constant 3.200000e+01 : f32
    %4 = vector.broadcast %cst_2 : f32 to vector<16x1xf32>
    %5 = arith.divf %3, %4 : vector<16x1xf32>
    %6 = vector.broadcast %5 : vector<16x1xf32> to vector<16x32xf32>
    %7 = arith.subf %1, %6 : vector<16x32xf32>
    %8 = arith.mulf %7, %7 : vector<16x32xf32>
    %cst_3 = arith.constant dense<0.000000e+00> : vector<16xf32>
    %9 = vector.multi_reduction <add>, %8, %cst_3 [1] : vector<16x32xf32> to vector<16xf32>
    %10 = vector.shape_cast %9 : vector<16xf32> to vector<16x1xf32>
    %cst_4 = arith.constant 3.200000e+01 : f32
    %11 = vector.broadcast %cst_4 : f32 to vector<16x1xf32>
    %12 = arith.divf %10, %11 : vector<16x1xf32>
    %cst_5 = arith.constant 9.99999974E-6 : f32
    %13 = vector.broadcast %cst_5 : f32 to vector<16x1xf32>
    %14 = arith.addf %12, %13 : vector<16x1xf32>
    %15 = math.rsqrt %14 : vector<16x1xf32>
    %16 = vector.broadcast %15 : vector<16x1xf32> to vector<16x32xf32>
    %17 = arith.mulf %7, %16 : vector<16x32xf32>
    %c0_6 = arith.constant 0 : index
    %c0_7 = arith.constant 0 : index
    %18 = vector.load %arg2[%c0_6, %c0_7] : memref<32x32xf32, #tpu.memory_space<vmem>>, vector<32x32xf32>
    %cst_8 = arith.constant dense<0.000000e+00> : vector<16x32xf32>
    %19 = tpu.matmul %17, %18, %cst_8 {dimension_numbers = #tpu.dot_dimension_numbers<[1], [0], [0], [1], [0, 0, 1, 1], [], []>} : vector<16x32xf32>, vector<32x32xf32>, vector<16x32xf32> -> vector<16x32xf32>
    %c0_9 = arith.constant 0 : index
    %c0_10 = arith.constant 0 : index
    %20 = vector.load %arg3[%c0_9, %c0_10] : memref<32x32xf32, #tpu.memory_space<vmem>>, vector<32x32xf32>
    %cst_11 = arith.constant dense<0.000000e+00> : vector<16x32xf32>
    %21 = tpu.matmul %17, %20, %cst_11 {dimension_numbers = #tpu.dot_dimension_numbers<[1], [0], [0], [1], [0, 0, 1, 1], [], []>} : vector<16x32xf32>, vector<32x32xf32>, vector<16x32xf32> -> vector<16x32xf32>
    %c0_12 = arith.constant 0 : index
    %c0_13 = arith.constant 0 : index
    %22 = vector.load %arg4[%c0_12, %c0_13] : memref<32x32xf32, #tpu.memory_space<vmem>>, vector<32x32xf32>
    %cst_14 = arith.constant dense<0.000000e+00> : vector<16x32xf32>
    %23 = tpu.matmul %17, %22, %cst_14 {dimension_numbers = #tpu.dot_dimension_numbers<[1], [0], [0], [1], [0, 0, 1, 1], [], []>} : vector<16x32xf32>, vector<32x32xf32>, vector<16x32xf32> -> vector<16x32xf32>
    %24 = vector.shape_cast %19 : vector<16x32xf32> to vector<2x8x32xf32>
    %25 = vector.shape_cast %21 : vector<16x32xf32> to vector<2x8x32xf32>
    %26 = vector.shape_cast %23 : vector<16x32xf32> to vector<2x8x32xf32>
    %27 = tpu.iota {dimensions = array<i32: 0>} : vector<8x8xi32>
    %28 = tpu.iota {dimensions = array<i32: 1>} : vector<8x8xi32>
    %29 = arith.cmpi sge, %27, %28 : vector<8x8xi32>
    %30 = vector.shape_cast %29 : vector<8x8xi1> to vector<1x8x8xi1>
    %cst_15 = arith.constant 0.000000e+00 : f32
    %31 = vector.broadcast %cst_15 : f32 to vector<16x32xf32>
    %32 = vector.extract_strided_slice %24 {offsets = [0, 0, 0], sizes = [2, 8, 8], strides = [1, 1, 1]} : vector<2x8x32xf32> to vector<2x8x8xf32>
    %33 = vector.extract_strided_slice %25 {offsets = [0, 0, 0], sizes = [2, 8, 8], strides = [1, 1, 1]} : vector<2x8x32xf32> to vector<2x8x8xf32>
    %34 = vector.extract_strided_slice %26 {offsets = [0, 0, 0], sizes = [2, 8, 8], strides = [1, 1, 1]} : vector<2x8x32xf32> to vector<2x8x8xf32>
    "tpu.trace_start"() <{level = 10 : i32, message = "bqd,bkd->bqk"}> : () -> ()
    %cst_16 = arith.constant dense<0.000000e+00> : vector<2x8x8xf32>
    %35 = tpu.matmul %32, %33, %cst_16 {dimension_numbers = #tpu.dot_dimension_numbers<[2], [2], [1], [1], [0, 0, 0, 1, 1, 1], [0], [0]>} : vector<2x8x8xf32>, vector<2x8x8xf32>, vector<2x8x8xf32> -> vector<2x8x8xf32>
    "tpu.trace_stop"() : () -> ()
    %cst_17 = arith.constant 0.353553385 : f32
    %36 = vector.broadcast %cst_17 : f32 to vector<2x8x8xf32>
    %37 = arith.mulf %35, %36 : vector<2x8x8xf32>
    %cst_18 = arith.constant 0xFF800000 : f32
    %38 = vector.shape_cast %30 : vector<1x8x8xi1> to vector<1x8x8xi1>
    %39 = vector.broadcast %38 : vector<1x8x8xi1> to vector<2x8x8xi1>
    %40 = vector.broadcast %cst_18 : f32 to vector<2x8x8xf32>
    %41 = arith.select %39, %37, %40 : vector<2x8x8xi1>, vector<2x8x8xf32>
    %cst_19 = arith.constant dense<0xFF800000> : vector<2x8xf32>
    %42 = vector.multi_reduction <maximumf>, %41, %cst_19 [2] : vector<2x8x8xf32> to vector<2x8xf32>
    %43 = vector.shape_cast %42 : vector<2x8xf32> to vector<2x8x1xf32>
    %44 = vector.broadcast %43 : vector<2x8x1xf32> to vector<2x8x8xf32>
    %45 = arith.subf %41, %44 : vector<2x8x8xf32>
    %46 = math.exp %45 : vector<2x8x8xf32>
    %cst_20 = arith.constant dense<0.000000e+00> : vector<2x8xf32>
    %47 = vector.multi_reduction <add>, %46, %cst_20 [2] : vector<2x8x8xf32> to vector<2x8xf32>
    %48 = vector.shape_cast %47 : vector<2x8xf32> to vector<2x8x1xf32>
    %49 = tpu.reciprocal %48 {approx = true} : vector<2x8x1xf32> -> vector<2x8x1xf32>
    %50 = vector.broadcast %49 : vector<2x8x1xf32> to vector<2x8x8xf32>
    %51 = arith.mulf %46, %50 : vector<2x8x8xf32>
    "tpu.trace_start"() <{level = 10 : i32, message = "bqk,bkd->bqd"}> : () -> ()
    %cst_21 = arith.constant dense<0.000000e+00> : vector<2x8x8xf32>
    %52 = tpu.matmul %51, %34, %cst_21 {dimension_numbers = #tpu.dot_dimension_numbers<[2], [1], [1], [2], [0, 0, 0, 1, 1, 2], [0], [0]>} : vector<2x8x8xf32>, vector<2x8x8xf32>, vector<2x8x8xf32> -> vector<2x8x8xf32>
    "tpu.trace_stop"() : () -> ()
    %53 = vector.shape_cast %52 : vector<2x8x8xf32> to vector<16x8xf32>
    %c0_22 = arith.constant 0 : index
    %c0_23 = arith.constant 0 : index
    %54 = vector.load %arg5[%c0_22, %c0_23] : memref<32x32xf32, #tpu.memory_space<vmem>>, vector<8x32xf32>
    %cst_24 = arith.constant dense<0.000000e+00> : vector<16x32xf32>
    %55 = tpu.matmul %53, %54, %cst_24 {dimension_numbers = #tpu.dot_dimension_numbers<[1], [0], [0], [1], [0, 0, 1, 1], [], []>} : vector<16x8xf32>, vector<8x32xf32>, vector<16x32xf32> -> vector<16x32xf32>
    %56 = arith.addf %31, %55 : vector<16x32xf32>
    %57 = vector.extract_strided_slice %24 {offsets = [0, 0, 8], sizes = [2, 8, 8], strides = [1, 1, 1]} : vector<2x8x32xf32> to vector<2x8x8xf32>
    %58 = vector.extract_strided_slice %25 {offsets = [0, 0, 8], sizes = [2, 8, 8], strides = [1, 1, 1]} : vector<2x8x32xf32> to vector<2x8x8xf32>
    %59 = vector.extract_strided_slice %26 {offsets = [0, 0, 8], sizes = [2, 8, 8], strides = [1, 1, 1]} : vector<2x8x32xf32> to vector<2x8x8xf32>
    "tpu.trace_start"() <{level = 10 : i32, message = "bqd,bkd->bqk"}> : () -> ()
    %cst_25 = arith.constant dense<0.000000e+00> : vector<2x8x8xf32>
    %60 = tpu.matmul %57, %58, %cst_25 {dimension_numbers = #tpu.dot_dimension_numbers<[2], [2], [1], [1], [0, 0, 0, 1, 1, 1], [0], [0]>} : vector<2x8x8xf32>, vector<2x8x8xf32>, vector<2x8x8xf32> -> vector<2x8x8xf32>
    "tpu.trace_stop"() : () -> ()
    %cst_26 = arith.constant 0.353553385 : f32
    %61 = vector.broadcast %cst_26 : f32 to vector<2x8x8xf32>
    %62 = arith.mulf %60, %61 : vector<2x8x8xf32>
    %cst_27 = arith.constant 0xFF800000 : f32
    %63 = vector.shape_cast %30 : vector<1x8x8xi1> to vector<1x8x8xi1>
    %64 = vector.broadcast %63 : vector<1x8x8xi1> to vector<2x8x8xi1>
    %65 = vector.broadcast %cst_27 : f32 to vector<2x8x8xf32>
    %66 = arith.select %64, %62, %65 : vector<2x8x8xi1>, vector<2x8x8xf32>
    %cst_28 = arith.constant dense<0xFF800000> : vector<2x8xf32>
    %67 = vector.multi_reduction <maximumf>, %66, %cst_28 [2] : vector<2x8x8xf32> to vector<2x8xf32>
    %68 = vector.shape_cast %67 : vector<2x8xf32> to vector<2x8x1xf32>
    %69 = vector.broadcast %68 : vector<2x8x1xf32> to vector<2x8x8xf32>
    %70 = arith.subf %66, %69 : vector<2x8x8xf32>
    %71 = math.exp %70 : vector<2x8x8xf32>
    %cst_29 = arith.constant dense<0.000000e+00> : vector<2x8xf32>
    %72 = vector.multi_reduction <add>, %71, %cst_29 [2] : vector<2x8x8xf32> to vector<2x8xf32>
    %73 = vector.shape_cast %72 : vector<2x8xf32> to vector<2x8x1xf32>
    %74 = tpu.reciprocal %73 {approx = true} : vector<2x8x1xf32> -> vector<2x8x1xf32>
    %75 = vector.broadcast %74 : vector<2x8x1xf32> to vector<2x8x8xf32>
    %76 = arith.mulf %71, %75 : vector<2x8x8xf32>
    "tpu.trace_start"() <{level = 10 : i32, message = "bqk,bkd->bqd"}> : () -> ()
    %cst_30 = arith.constant dense<0.000000e+00> : vector<2x8x8xf32>
    %77 = tpu.matmul %76, %59, %cst_30 {dimension_numbers = #tpu.dot_dimension_numbers<[2], [1], [1], [2], [0, 0, 0, 1, 1, 2], [0], [0]>} : vector<2x8x8xf32>, vector<2x8x8xf32>, vector<2x8x8xf32> -> vector<2x8x8xf32>
    "tpu.trace_stop"() : () -> ()
    %78 = vector.shape_cast %77 : vector<2x8x8xf32> to vector<16x8xf32>
    %c8 = arith.constant 8 : index
    %c0_31 = arith.constant 0 : index
    %79 = vector.load %arg5[%c8, %c0_31] : memref<32x32xf32, #tpu.memory_space<vmem>>, vector<8x32xf32>
    %cst_32 = arith.constant dense<0.000000e+00> : vector<16x32xf32>
    %80 = tpu.matmul %78, %79, %cst_32 {dimension_numbers = #tpu.dot_dimension_numbers<[1], [0], [0], [1], [0, 0, 1, 1], [], []>} : vector<16x8xf32>, vector<8x32xf32>, vector<16x32xf32> -> vector<16x32xf32>
    %81 = arith.addf %56, %80 : vector<16x32xf32>
    %82 = vector.extract_strided_slice %24 {offsets = [0, 0, 16], sizes = [2, 8, 8], strides = [1, 1, 1]} : vector<2x8x32xf32> to vector<2x8x8xf32>
    %83 = vector.extract_strided_slice %25 {offsets = [0, 0, 16], sizes = [2, 8, 8], strides = [1, 1, 1]} : vector<2x8x32xf32> to vector<2x8x8xf32>
    %84 = vector.extract_strided_slice %26 {offsets = [0, 0, 16], sizes = [2, 8, 8], strides = [1, 1, 1]} : vector<2x8x32xf32> to vector<2x8x8xf32>
    "tpu.trace_start"() <{level = 10 : i32, message = "bqd,bkd->bqk"}> : () -> ()
    %cst_33 = arith.constant dense<0.000000e+00> : vector<2x8x8xf32>
    %85 = tpu.matmul %82, %83, %cst_33 {dimension_numbers = #tpu.dot_dimension_numbers<[2], [2], [1], [1], [0, 0, 0, 1, 1, 1], [0], [0]>} : vector<2x8x8xf32>, vector<2x8x8xf32>, vector<2x8x8xf32> -> vector<2x8x8xf32>
    "tpu.trace_stop"() : () -> ()
    %cst_34 = arith.constant 0.353553385 : f32
    %86 = vector.broadcast %cst_34 : f32 to vector<2x8x8xf32>
    %87 = arith.mulf %85, %86 : vector<2x8x8xf32>
    %cst_35 = arith.constant 0xFF800000 : f32
    %88 = vector.shape_cast %30 : vector<1x8x8xi1> to vector<1x8x8xi1>
    %89 = vector.broadcast %88 : vector<1x8x8xi1> to vector<2x8x8xi1>
    %90 = vector.broadcast %cst_35 : f32 to vector<2x8x8xf32>
    %91 = arith.select %89, %87, %90 : vector<2x8x8xi1>, vector<2x8x8xf32>
    %cst_36 = arith.constant dense<0xFF800000> : vector<2x8xf32>
    %92 = vector.multi_reduction <maximumf>, %91, %cst_36 [2] : vector<2x8x8xf32> to vector<2x8xf32>
    %93 = vector.shape_cast %92 : vector<2x8xf32> to vector<2x8x1xf32>
    %94 = vector.broadcast %93 : vector<2x8x1xf32> to vector<2x8x8xf32>
    %95 = arith.subf %91, %94 : vector<2x8x8xf32>
    %96 = math.exp %95 : vector<2x8x8xf32>
    %cst_37 = arith.constant dense<0.000000e+00> : vector<2x8xf32>
    %97 = vector.multi_reduction <add>, %96, %cst_37 [2] : vector<2x8x8xf32> to vector<2x8xf32>
    %98 = vector.shape_cast %97 : vector<2x8xf32> to vector<2x8x1xf32>
    %99 = tpu.reciprocal %98 {approx = true} : vector<2x8x1xf32> -> vector<2x8x1xf32>
    %100 = vector.broadcast %99 : vector<2x8x1xf32> to vector<2x8x8xf32>
    %101 = arith.mulf %96, %100 : vector<2x8x8xf32>
    "tpu.trace_start"() <{level = 10 : i32, message = "bqk,bkd->bqd"}> : () -> ()
    %cst_38 = arith.constant dense<0.000000e+00> : vector<2x8x8xf32>
    %102 = tpu.matmul %101, %84, %cst_38 {dimension_numbers = #tpu.dot_dimension_numbers<[2], [1], [1], [2], [0, 0, 0, 1, 1, 2], [0], [0]>} : vector<2x8x8xf32>, vector<2x8x8xf32>, vector<2x8x8xf32> -> vector<2x8x8xf32>
    "tpu.trace_stop"() : () -> ()
    %103 = vector.shape_cast %102 : vector<2x8x8xf32> to vector<16x8xf32>
    %c16 = arith.constant 16 : index
    %c0_39 = arith.constant 0 : index
    %104 = vector.load %arg5[%c16, %c0_39] : memref<32x32xf32, #tpu.memory_space<vmem>>, vector<8x32xf32>
    %cst_40 = arith.constant dense<0.000000e+00> : vector<16x32xf32>
    %105 = tpu.matmul %103, %104, %cst_40 {dimension_numbers = #tpu.dot_dimension_numbers<[1], [0], [0], [1], [0, 0, 1, 1], [], []>} : vector<16x8xf32>, vector<8x32xf32>, vector<16x32xf32> -> vector<16x32xf32>
    %106 = arith.addf %81, %105 : vector<16x32xf32>
    %107 = vector.extract_strided_slice %24 {offsets = [0, 0, 24], sizes = [2, 8, 8], strides = [1, 1, 1]} : vector<2x8x32xf32> to vector<2x8x8xf32>
    %108 = vector.extract_strided_slice %25 {offsets = [0, 0, 24], sizes = [2, 8, 8], strides = [1, 1, 1]} : vector<2x8x32xf32> to vector<2x8x8xf32>
    %109 = vector.extract_strided_slice %26 {offsets = [0, 0, 24], sizes = [2, 8, 8], strides = [1, 1, 1]} : vector<2x8x32xf32> to vector<2x8x8xf32>
    "tpu.trace_start"() <{level = 10 : i32, message = "bqd,bkd->bqk"}> : () -> ()
    %cst_41 = arith.constant dense<0.000000e+00> : vector<2x8x8xf32>
    %110 = tpu.matmul %107, %108, %cst_41 {dimension_numbers = #tpu.dot_dimension_numbers<[2], [2], [1], [1], [0, 0, 0, 1, 1, 1], [0], [0]>} : vector<2x8x8xf32>, vector<2x8x8xf32>, vector<2x8x8xf32> -> vector<2x8x8xf32>
    "tpu.trace_stop"() : () -> ()
    %cst_42 = arith.constant 0.353553385 : f32
    %111 = vector.broadcast %cst_42 : f32 to vector<2x8x8xf32>
    %112 = arith.mulf %110, %111 : vector<2x8x8xf32>
    %cst_43 = arith.constant 0xFF800000 : f32
    %113 = vector.shape_cast %30 : vector<1x8x8xi1> to vector<1x8x8xi1>
    %114 = vector.broadcast %113 : vector<1x8x8xi1> to vector<2x8x8xi1>
    %115 = vector.broadcast %cst_43 : f32 to vector<2x8x8xf32>
    %116 = arith.select %114, %112, %115 : vector<2x8x8xi1>, vector<2x8x8xf32>
    %cst_44 = arith.constant dense<0xFF800000> : vector<2x8xf32>
    %117 = vector.multi_reduction <maximumf>, %116, %cst_44 [2] : vector<2x8x8xf32> to vector<2x8xf32>
    %118 = vector.shape_cast %117 : vector<2x8xf32> to vector<2x8x1xf32>
    %119 = vector.broadcast %118 : vector<2x8x1xf32> to vector<2x8x8xf32>
    %120 = arith.subf %116, %119 : vector<2x8x8xf32>
    %121 = math.exp %120 : vector<2x8x8xf32>
    %cst_45 = arith.constant dense<0.000000e+00> : vector<2x8xf32>
    %122 = vector.multi_reduction <add>, %121, %cst_45 [2] : vector<2x8x8xf32> to vector<2x8xf32>
    %123 = vector.shape_cast %122 : vector<2x8xf32> to vector<2x8x1xf32>
    %124 = tpu.reciprocal %123 {approx = true} : vector<2x8x1xf32> -> vector<2x8x1xf32>
    %125 = vector.broadcast %124 : vector<2x8x1xf32> to vector<2x8x8xf32>
    %126 = arith.mulf %121, %125 : vector<2x8x8xf32>
    "tpu.trace_start"() <{level = 10 : i32, message = "bqk,bkd->bqd"}> : () -> ()
    %cst_46 = arith.constant dense<0.000000e+00> : vector<2x8x8xf32>
    %127 = tpu.matmul %126, %109, %cst_46 {dimension_numbers = #tpu.dot_dimension_numbers<[2], [1], [1], [2], [0, 0, 0, 1, 1, 2], [0], [0]>} : vector<2x8x8xf32>, vector<2x8x8xf32>, vector<2x8x8xf32> -> vector<2x8x8xf32>
    "tpu.trace_stop"() : () -> ()
    %128 = vector.shape_cast %127 : vector<2x8x8xf32> to vector<16x8xf32>
    %c24 = arith.constant 24 : index
    %c0_47 = arith.constant 0 : index
    %129 = vector.load %arg5[%c24, %c0_47] : memref<32x32xf32, #tpu.memory_space<vmem>>, vector<8x32xf32>
    %cst_48 = arith.constant dense<0.000000e+00> : vector<16x32xf32>
    %130 = tpu.matmul %128, %129, %cst_48 {dimension_numbers = #tpu.dot_dimension_numbers<[1], [0], [0], [1], [0, 0, 1, 1], [], []>} : vector<16x8xf32>, vector<8x32xf32>, vector<16x32xf32> -> vector<16x32xf32>
    %131 = arith.addf %106, %130 : vector<16x32xf32>
    %132 = arith.addf %1, %131 : vector<16x32xf32>
    %c0_49 = arith.constant 0 : index
    %c0_50 = arith.constant 0 : index
    %133 = vector.load %arg6[%c0_49, %c0_50] : memref<1x32xf32, #tpu.memory_space<vmem>>, vector<1x32xf32>
    %134 = vector.shape_cast %133 : vector<1x32xf32> to vector<32xf32>
    %135 = vector.shape_cast %134 : vector<32xf32> to vector<1x32xf32>
    %136 = vector.broadcast %135 : vector<1x32xf32> to vector<16x32xf32>
    %137 = arith.addf %132, %136 : vector<16x32xf32>
    %cst_51 = arith.constant dense<0.000000e+00> : vector<16xf32>
    %138 = vector.multi_reduction <add>, %137, %cst_51 [1] : vector<16x32xf32> to vector<16xf32>
    %139 = vector.shape_cast %138 : vector<16xf32> to vector<16x1xf32>
    %cst_52 = arith.constant 3.200000e+01 : f32
    %140 = vector.broadcast %cst_52 : f32 to vector<16x1xf32>
    %141 = arith.divf %139, %140 : vector<16x1xf32>
    %142 = vector.broadcast %141 : vector<16x1xf32> to vector<16x32xf32>
    %143 = arith.subf %137, %142 : vector<16x32xf32>
    %144 = arith.mulf %143, %143 : vector<16x32xf32>
    %cst_53 = arith.constant dense<0.000000e+00> : vector<16xf32>
    %145 = vector.multi_reduction <add>, %144, %cst_53 [1] : vector<16x32xf32> to vector<16xf32>
    %146 = vector.shape_cast %145 : vector<16xf32> to vector<16x1xf32>
    %cst_54 = arith.constant 3.200000e+01 : f32
    %147 = vector.broadcast %cst_54 : f32 to vector<16x1xf32>
    %148 = arith.divf %146, %147 : vector<16x1xf32>
    %cst_55 = arith.constant 9.99999974E-6 : f32
    %149 = vector.broadcast %cst_55 : f32 to vector<16x1xf32>
    %150 = arith.addf %148, %149 : vector<16x1xf32>
    %151 = math.rsqrt %150 : vector<16x1xf32>
    %152 = vector.broadcast %151 : vector<16x1xf32> to vector<16x32xf32>
    %153 = arith.mulf %143, %152 : vector<16x32xf32>
    %c0_56 = arith.constant 0 : index
    %c0_57 = arith.constant 0 : index
    %154 = vector.load %arg7[%c0_56, %c0_57] : memref<32x128xf32, #tpu.memory_space<vmem>>, vector<32x128xf32>
    %cst_58 = arith.constant dense<0.000000e+00> : vector<16x128xf32>
    %155 = tpu.matmul %153, %154, %cst_58 {dimension_numbers = #tpu.dot_dimension_numbers<[1], [0], [0], [1], [0, 0, 1, 1], [], []>} : vector<16x32xf32>, vector<32x128xf32>, vector<16x128xf32> -> vector<16x128xf32>
    %c0_59 = arith.constant 0 : index
    %c0_60 = arith.constant 0 : index
    %156 = vector.load %arg8[%c0_59, %c0_60] : memref<1x128xf32, #tpu.memory_space<vmem>>, vector<1x128xf32>
    %157 = vector.shape_cast %156 : vector<1x128xf32> to vector<128xf32>
    %158 = vector.shape_cast %157 : vector<128xf32> to vector<1x128xf32>
    %159 = vector.broadcast %158 : vector<1x128xf32> to vector<16x128xf32>
    %160 = arith.addf %155, %159 : vector<16x128xf32>
    %cst_61 = arith.constant 0.000000e+00 : f32
    %161 = vector.broadcast %cst_61 : f32 to vector<16x128xf32>
    %162 = arith.maximumf %160, %161 : vector<16x128xf32>
    %c0_62 = arith.constant 0 : index
    %c0_63 = arith.constant 0 : index
    %163 = vector.load %arg9[%c0_62, %c0_63] : memref<128x32xf32, #tpu.memory_space<vmem>>, vector<128x32xf32>
    %cst_64 = arith.constant dense<0.000000e+00> : vector<16x32xf32>
    %164 = tpu.matmul %162, %163, %cst_64 {dimension_numbers = #tpu.dot_dimension_numbers<[1], [0], [0], [1], [0, 0, 1, 1], [], []>} : vector<16x128xf32>, vector<128x32xf32>, vector<16x32xf32> -> vector<16x32xf32>
    %c0_65 = arith.constant 0 : index
    %c0_66 = arith.constant 0 : index
    %165 = vector.load %arg10[%c0_65, %c0_66] : memref<1x32xf32, #tpu.memory_space<vmem>>, vector<1x32xf32>
    %166 = vector.shape_cast %165 : vector<1x32xf32> to vector<32xf32>
    %167 = vector.shape_cast %166 : vector<32xf32> to vector<1x32xf32>
    %168 = vector.broadcast %167 : vector<1x32xf32> to vector<16x32xf32>
    %169 = arith.addf %164, %168 : vector<16x32xf32>
    %170 = arith.addf %137, %169 : vector<16x32xf32>
    %171 = vector.shape_cast %170 : vector<16x32xf32> to vector<2x8x32xf32>
    %c0_67 = arith.constant 0 : index
    %c0_68 = arith.constant 0 : index
    %c0_69 = arith.constant 0 : index
    %172 = vector.load %arg11[%c0_67, %c0_68, %c0_69] : memref<2x8x32xf32, #tpu.memory_space<vmem>>, vector<2x8x32xf32>
    tpu.vector_store %arg11[%c0_67, %c0_68, %c0_69], %171 {strides = array<i32>} : memref<2x8x32xf32, #tpu.memory_space<vmem>>, vector<2x8x32xf32>,
    return
  }
  func.func @transform_0(%arg0: i32) -> (i32, i32, i32) {
    %c0_i32 = arith.constant 0 : i32
    %c0_i32_0 = arith.constant 0 : i32
    %c0_i32_1 = arith.constant 0 : i32
    %c0_i32_2 = arith.constant 0 : i32
    return %c0_i32, %c0_i32_0, %c0_i32_1 : i32, i32, i32
  }
  func.func @transform_1(%arg0: i32) -> (i32, i32) {
    %c0_i32 = arith.constant 0 : i32
    %c0_i32_0 = arith.constant 0 : i32
    %c0_i32_1 = arith.constant 0 : i32
    return %c0_i32, %c0_i32_0 : i32, i32
  }
  func.func @transform_2(%arg0: i32) -> (i32, i32) {
    %c0_i32 = arith.constant 0 : i32
    %c0_i32_0 = arith.constant 0 : i32
    %c0_i32_1 = arith.constant 0 : i32
    return %c0_i32, %c0_i32_0 : i32, i32
  }
  func.func @transform_3(%arg0: i32) -> (i32, i32) {
    %c0_i32 = arith.constant 0 : i32
    %c0_i32_0 = arith.constant 0 : i32
    %c0_i32_1 = arith.constant 0 : i32
    return %c0_i32, %c0_i32_0 : i32, i32
  }
  func.func @transform_4(%arg0: i32) -> (i32, i32) {
    %c0_i32 = arith.constant 0 : i32
    %c0_i32_0 = arith.constant 0 : i32
    %c0_i32_1 = arith.constant 0 : i32
    return %c0_i32, %c0_i32_0 : i32, i32
  }
  func.func @transform_5(%arg0: i32) -> (i32, i32) {
    %c0_i32 = arith.constant 0 : i32
    %c0_i32_0 = arith.constant 0 : i32
    %c0_i32_1 = arith.constant 0 : i32
    return %c0_i32, %c0_i32_0 : i32, i32
  }
  func.func @transform_6(%arg0: i32) -> (i32, i32) {
    %c0_i32 = arith.constant 0 : i32
    %c0_i32_0 = arith.constant 0 : i32
    %c0_i32_1 = arith.constant 0 : i32
    return %c0_i32, %c0_i32_0 : i32, i32
  }
  func.func @transform_7(%arg0: i32) -> (i32, i32) {
    %c0_i32 = arith.constant 0 : i32
    %c0_i32_0 = arith.constant 0 : i32
    %c0_i32_1 = arith.constant 0 : i32
    return %c0_i32, %c0_i32_0 : i32, i32
  }
  func.func @transform_8(%arg0: i32) -> (i32, i32) {
    %c0_i32 = arith.constant 0 : i32
    %c0_i32_0 = arith.constant 0 : i32
    %c0_i32_1 = arith.constant 0 : i32
    return %c0_i32, %c0_i32_0 : i32, i32
  }
  func.func @transform_9(%arg0: i32) -> (i32, i32) {
    %c0_i32 = arith.constant 0 : i32
    %c0_i32_0 = arith.constant 0 : i32
    %c0_i32_1 = arith.constant 0 : i32
    return %c0_i32, %c0_i32_0 : i32, i32
  }
  func.func @transform_10(%arg0: i32) -> (i32, i32, i32) {
    %c0_i32 = arith.constant 0 : i32
    %c0_i32_0 = arith.constant 0 : i32
    %c0_i32_1 = arith.constant 0 : i32
    %c0_i32_2 = arith.constant 0 : i32
    return %c0_i32, %c0_i32_0, %c0_i32_1 : i32, i32, i32
  }
}

</mosaic_0001>

<bundles_post_ra>
// kernel: tpu_custom_call.1
= control target key start
LH: loop header
LB: loop body
LE: loop exit
PB: predicated region body
PF: predicated region fallthrough
CT: control target
= control target key end

     0   :  { %15 = vsyncpa [#allocation3], 0  ;;  %s1537_s0 = inlined_call_operand.hbm [shape: f32[2,8,32], index: 0, kind: input, shape index: {}]   ;;  %s1538_s1 = inlined_call_operand.vmem [shape: f32[32,32], index: 1, kind: input, shape index: {}]   ;;  %s1539_s2 = inlined_call_operand.vmem [shape: f32[32,32], index: 2, kind: input, shape index: {}]   ;;  %s1540_s3 = inlined_call_operand.vmem [shape: f32[32,32], index: 3, kind: input, shape index: {}]   ;;  %s1541_s4 = inlined_call_operand.vmem [shape: f32[32,32], index: 4, kind: input, shape index: {}]   ;;  %s1542_s5 = inlined_call_operand.vmem [shape: f32[1,32], index: 5, kind: input, shape index: {}]   ;;  %s1543_s6 = inlined_call_operand.vmem [shape: f32[32,128], index: 6, kind: input, shape index: {}]   ;;  %s1544_s7 = inlined_call_operand.vmem [shape: f32[1,128], index: 7, kind: input, shape index: {}]   ;;  %s1545_s8 = inlined_call_operand.vmem [shape: f32[128,32], index: 8, kind: input, shape index: {}]   ;;  %s1546_s9 = inlined_call_operand.vmem [shape: f32[1,32], index: 9, kind: input, shape index: {}]   ;;  %s1547_s10 = inlined_call_operand.hbm [shape: f32[2,8,32], index: 10, kind: output, shape index: {}]  }
   0x1   :  { %16 = vsyncpa [#allocation4], 0  ;;  %s21_s15 = sshll.u32 %s1537_s0, 4  ;;  %s1160_s16 = smov [#allocation2]   ;;  %s22_s15 = int_to_ptr.hbm [resolvable:$true] %s21_s15 }
   0x2   :  { %s23_s17 = sshll.u32 %s1160_s16, 4  ;;  %s1161_s18 = smov 128   ;;  %s24_s17 = int_to_ptr.vmem [resolvable:$true] %s23_s17 }
   0x3   :  { %s1162_s19 = smov 8  }
   0x4   :  { %29 = dma.hbm_to_vmem [thread:$0]  %s22_s15, 256, %s24_s17, [#allocation3], %s1161_s18, %s1161_s18, %s1162_s19  }
   0x5   :  { %1156 = dma.done.wait [#allocation3], 256  }
   0x6   :  { %1157 = vsyncadd [#allocation3], 4294967040  ;;  %vm54_vm0 = vcmask 261120   ;;  %v1229_v0 = vld [vmem:[#allocation2] sm:$0xff]  ;;  %v1231_v1 = vld [vmem:[#allocation2 + $0x8] sm:$0xff]  ;;  %v1163_v4 = vmov 32.0   ;;  %v193_v63 = vlaneseq }
   0x7   :  { %v55_v2 = vsel %vm54_vm0, %v1229_v0, 0.0  ;;  %v58_v3 = vsel %vm54_vm0, %v1231_v1, 0.0  ;;  %1066 = vrcp.f32 %v1163_v4  ;;  %v109_v21 = vld [vmem:[%s1538_s1 + $0x18] sm:$0xff]  ;;  %v108_v23 = vld [vmem:[%s1538_s1 + $0x10] sm:$0xff]  ;;  %v107_v25 = vld [vmem:[%s1538_s1 + $0x8] sm:$0xff]  ;;  %vm198_vm8 = vcmask 64512  }
   0x8   :  { %56 = vadd.xlane.f32.xlu0 %v55_v2  ;;  %59 = vadd.xlane.f32.xlu1 %v58_v3  ;;  %v142_v22 = vld [vmem:[%s1539_s2 + $0x18] sm:$0xff]  ;;  %v141_v24 = vld [vmem:[%s1539_s2 + $0x10] sm:$0xff]  ;;  %v140_v26 = vld [vmem:[%s1539_s2 + $0x8] sm:$0xff]  ;;  %v194_v2 = vshrl.u32 %v193_v63, 7  ;;  %v196_v3 = vand.u32 127, %v193_v63  ;;  %s1165_s22 = smov 112  }
   0x9   :  { %128 = vmatpush.msra.mxu0 %v109_v21  ;;  %155 = vmatpush.msra.mxu2 %v142_v22  ;;  %v106_v27 = vld [vmem:[%s1538_s1] sm:$0xff]  ;;  %v169_v33 = vld [vmem:[%s1540_s3 + $0x18] sm:$0xff]  ;;  %v168_v34 = vld [vmem:[%s1540_s3 + $0x10] sm:$0xff]  ;;  %s1166_s23 = smov 104   ;;  %s997_s30 = sshll.u32 %s1547_s10, 4  ;;  %s998_s30 = int_to_ptr.hbm [resolvable:$true] %s997_s30 }
   0xa   :  { %v139_v28 = vld [vmem:[%s1539_s2] sm:$0xff]  ;;  %v167_v37 = vld [vmem:[%s1540_s3 + $0x8] sm:$0xff]  ;;  %vm1322_vm9 = vcmp.ge.s32.totalorder %v194_v2, %v196_v3 }
   0xb   :  { %129 = vmatpush.msra.mxu0 %v108_v23  ;;  %156 = vmatpush.msra.mxu2 %v141_v24  ;;  %v166_v38 = vld [vmem:[%s1540_s3] sm:$0xff]  ;;  %s1164_s3 = smov 120  }
   0xd   :  { %v1067_v5 = vpop.eup %1066  ;;  %130 = vmatpush.msra.mxu0 %v107_v25  ;;  %157 = vmatpush.msra.mxu2 %v140_v26 }
   0xe   :  { %v62_v6 = vmul.f32 32.0, %v1067_v5  ;;  %vm66_vm1 = vweird.f32 %v1067_v5 }
   0xf   :  { %131 = vmatpush.msra.mxu0 %v106_v27  ;;  %158 = vmatpush.msra.mxu2 %v139_v28 }
  0x10   :  { %v63_v7 = vsub.f32 1.0, %v62_v6 }
  0x11   :  { %182 = vmatpush.msrb.mxu2 %v169_v33 }
  0x12   :  { %v64_v8 = vmul.f32 %v1067_v5, %v63_v7 }
  0x13   :  { %183 = vmatpush.msrb.mxu2 %v168_v34 }
  0x14   :  { %v65_v9 = vadd.f32 %v1067_v5, %v64_v8 }
  0x15   :  { %184 = vmatpush.msrb.mxu2 %v167_v37 }
  0x16   :  { %v1237_v10 = vsel %vm66_vm1, %v1067_v5, %v65_v9 }
  0x17   :  { %185 = vmatpush.msrb.mxu2 %v166_v38 }
  0x7b   :  { %v57_v11 = vpop.xlane.xlu0 %56  ;;  %v60_v12 = vpop.xlane.xlu1 %59 }
  0x7c   :  { %v68_v13 = vmul.f32 %v1237_v10, %v57_v11  ;;  %v69_v14 = vmul.f32 %v1237_v10, %v60_v12 }
  0x7e   :  { %v70_v15 = vsub.f32 %v1229_v0, %v68_v13  ;;  %v1243_v16 = vsub.f32 %v1231_v1, %v69_v14 }
  0x80   :  { %v72_v17 = vmul.f32 %v70_v15, %v70_v15  ;;  %v73_v18 = vmul.f32 %v1243_v16, %v1243_v16 }
  0x82   :  { %v74_v19 = vsel %vm54_vm0, %v72_v17, 0.0  ;;  %v77_v20 = vsel %vm54_vm0, %v73_v18, 0.0 }
  0x83   :  { %75 = vadd.xlane.f32.xlu0 %v74_v19  ;;  %78 = vadd.xlane.f32.xlu1 %v77_v20 }
  0xf6   :  { %v76_v29 = vpop.xlane.xlu0 %75  ;;  %v79_v30 = vpop.xlane.xlu1 %78 }
  0xf7   :  { %v80_v31 = vmul.f32 %v76_v29, %v1237_v10  ;;  %v81_v32 = vmul.f32 %v79_v30, %v1237_v10  ;;  %v325_v29 = vld [vmem:[%s1541_s4] sm:$0xff] }
  0xf9   :  { %v82_v35 = vadd.f32 1e-05, %v80_v31  ;;  %v83_v36 = vadd.f32 1e-05, %v81_v32 }
  0xfb   :  { %1068 = vrsqrt.f32 %v82_v35  ;;  %vm90_vm3 = vweird.f32 %v82_v35  ;;  %vm100_vm4 = vweird.f32 %v83_v36 }
  0xfc   :  { %1070 = vrsqrt.f32 %v83_v36 }
 0x101   :  { %v1069_v39 = vpop.eup %1068 }
 0x102   :  { %v1071_v40 = vpop.eup %1070  ;;  %v85_v41 = vmul.f32 %v1069_v39, %v82_v35  ;;  %vm91_vm2 = vweird.f32 %v1069_v39 }
 0x103   :  { %v95_v42 = vmul.f32 %v1071_v40, %v83_v36  ;;  %vm101_vm5 = vweird.f32 %v1071_v40  ;;  %vm92_vm6 = vmor %vm90_vm3, %vm91_vm2 }
 0x104   :  { %v86_v43 = vmul.f32 %v1069_v39, %v85_v41  ;;  %vm102_vm7 = vmor %vm100_vm4, %vm101_vm5 }
 0x105   :  { %v96_v44 = vmul.f32 %v1071_v40, %v95_v42 }
 0x106   :  { %v87_v45 = vmul.f32 0.5, %v86_v43 }
 0x107   :  { %v97_v46 = vmul.f32 0.5, %v96_v44 }
 0x108   :  { %v88_v47 = vsub.f32 1.5, %v87_v45 }
 0x109   :  { %v98_v48 = vsub.f32 1.5, %v97_v46 }
 0x10a   :  { %v89_v49 = vmul.f32 %v1069_v39, %v88_v47 }
 0x10b   :  { %v99_v51 = vmul.f32 %v1071_v40, %v98_v48 }
 0x10c   :  { %v93_v50 = vsel %vm92_vm6, %v1069_v39, %v89_v49 }
 0x10d   :  { %v104_v52 = vmul.f32 %v93_v50, %v70_v15  ;;  %v103_v53 = vsel %vm102_vm7, %v1071_v40, %v99_v51 }
 0x10e   :  { %v105_v54 = vmul.f32 %v103_v53, %v1243_v16 }
 0x10f   :  { %1010 = vmatmul.msk.f32.vlgmr.msra.gmra.mxu0 %vm54_vm0, %v104_v52  ;;  %1012 = vmatmul.msk.f32.vlgmr.msra.gmra.mxu2 %vm54_vm0, %v104_v52 }
 0x117   :  { %1013 = vmatmul.msk.f32.gmra.mxu2 %vm54_vm0, %v105_v54  ;;  %1011 = vmatmul.msk.f32.gmra.mxu0 %vm54_vm0, %v105_v54 }
 0x11f   :  { %1014 = vmatmul.msk.f32.vlgmr.msrb.gmra.mxu2 %vm54_vm0, %v104_v52 }
 0x127   :  { %1015 = vmatmul.msk.f32.gmra.mxu2 %vm54_vm0, %v105_v54 }
 0x18c   :  { %v1300_v56 = vpop.f32.mrf.mxu0 }
 0x192   :  { %v1294_v55 = vpop.f32.mrf.mxu2 }
 0x193   :  { %328 = vrot.lane.b32.xlu2 %v1294_v55, %s1164_s3  ;;  %1016 = vmatpush.xpose.msk.msra.mxu3 %vm198_vm8, %v1294_v55 }
 0x194   :  { %v1316_v60 = vpop.f32.mrf.mxu0 }
 0x196   :  { %1017 = vmatmul.msk.f32.vlgmr.msra.gmra.mxu3 %vm198_vm8, %v1300_v56 }
 0x19a   :  { %v1304_v57 = vpop.f32.mrf.mxu2 }
 0x19b   :  { %326 = vrot.lane.b32.xlu2 %v1300_v56, %s1164_s3  ;;  %1018 = vmatpush.xpose.msk.msrb.mxu3 %vm198_vm8, %v1304_v57 }
 0x19e   :  { %1019 = vmatmul.msk.f32.vlgmr.msrb.gmra.mxu3 %vm198_vm8, %v1316_v60 }
 0x1a2   :  { %v1310_v58 = vpop.f32.mrf.mxu2 }
 0x1a3   :  { %297 = vmatpush.msra.mxu3 %v1310_v58 }
 0x1aa   :  { %v1313_v59 = vpop.f32.mrf.mxu2 }
 0x1ab   :  { %320 = vmatpush.msrb.mxu0 %v1313_v59 }
 0x1ed   :  { %v329_v61 = vpop.permute.xlu2 %328 }
 0x1ee   :  { %1022 = vmatpush.xpose.msk.msra.mxu1 %vm198_vm8, %v329_v61 }
 0x1f5   :  { %v327_v62 = vpop.permute.xlu2 %326 }
 0x1f6   :  { %1023 = vmatmul.msk.f32.vlgmr.msra.gmra.mxu1 %vm198_vm8, %v327_v62  ;;  %v462_v62 = vld [vmem:[%s1541_s4 + $0x8] sm:$0xff] }
 0x1f7   :  { %484 = vmatpush.msrb.mxu1 %v462_v62 }
 0x219   :  { %v222_v4 = vpop.f32.mrf.mxu3 }
 0x21a   :  { %v251_v6 = vmul.f32 0.35355338, %v222_v4 }
 0x21c   :  { %v255_v7 = vsel %vm1322_vm9, %v251_v6, -inf }
 0x21d   :  { %v257_v8 = vsel %vm198_vm8, %v255_v7, -inf }
 0x21e   :  { %258 = vmax.xlane.f32.xlu0 %v257_v8 }
 0x221   :  { %v248_v17 = vpop.f32.mrf.mxu3 }
 0x222   :  { %v252_v20 = vmul.f32 0.35355338, %v248_v17 }
 0x224   :  { %v256_v21 = vsel %vm1322_vm9, %v252_v20, -inf }
 0x225   :  { %v260_v23 = vsel %vm198_vm8, %v256_v21, -inf }
 0x232   :  { %356 = vrot.lane.b32.xlu0 %v1304_v57, %s1164_s3 }
 0x273   :  { %v351_v9 = vpop.f32.mrf.mxu1 }
 0x274   :  { %v382_v11 = vmul.f32 0.35355338, %v351_v9 }
 0x276   :  { %v384_v12 = vsel %vm1322_vm9, %v382_v11, -inf }
 0x277   :  { %v386_v13 = vsel %vm198_vm8, %v384_v12, -inf }
 0x278   :  { %387 = vmax.xlane.f32.xlu1 %v386_v13 }
 0x291   :  { %409 = vrot.lane.b32.xlu1 %v1310_v58, %s1164_s3  ;;  %v259_v14 = vpop.xlane.xlu0 %258 }
 0x292   :  { %v263_v15 = vsub.f32 %v255_v7, %v259_v14 }
 0x294   :  { %v265_v16 = vmul.f32 1.442695, %v263_v15 }
 0x296   :  { %1072 = vpow2.f32 %v265_v16 }
 0x299   :  { %354 = vrot.lane.b32.xlu1 %v1316_v60, %s1164_s3 }
 0x29c   :  { %v1073_v18 = vpop.eup %1072 }
 0x29d   :  { %v269_v19 = vsel %vm198_vm8, %v1073_v18, 0.0 }
 0x29e   :  { %270 = vadd.xlane.f32.xlu2 %v269_v19 }
 0x2a1   :  { %521 = vrot.lane.b32.xlu1 %v1300_v56, %s1165_s22 }
 0x2a4   :  { %v357_v22 = vpop.permute.xlu0 %356 }
 0x2a5   :  { %1024 = vmatpush.xpose.msk.msra.mxu2 %vm198_vm8, %v357_v22 }
 0x2a6   :  { %261 = vmax.xlane.f32.xlu2 %v260_v23 }
 0x2a9   :  { %513 = vmatpush.msrb.mxu2 %v325_v29 }
 0x2be   :  { %436 = vrot.lane.b32.xlu2 %v1313_v59, %s1164_s3 }
 0x2c6   :  { %689 = vrot.lane.b32.xlu2 %v1294_v55, %s1166_s23 }
 0x2eb   :  { %v388_v24 = vpop.xlane.xlu1 %387 }
 0x2ec   :  { %v392_v25 = vsub.f32 %v384_v12, %v388_v24 }
 0x2ee   :  { %v394_v26 = vmul.f32 1.442695, %v392_v25 }
 0x2f0   :  { %1074 = vpow2.f32 %v394_v26 }
 0x2f6   :  { %v1075_v27 = vpop.eup %1074 }
 0x2f7   :  { %v398_v28 = vsel %vm198_vm8, %v1075_v27, 0.0 }
 0x2f8   :  { %399 = vadd.xlane.f32.xlu0 %v398_v28 }
 0x303   :  { %v410_v30 = vpop.permute.xlu1 %409 }
 0x304   :  { %430 = vmatpush.msrb.mxu3 %v410_v30 }
 0x30b   :  { %v355_v31 = vpop.permute.xlu1 %354 }
 0x30c   :  { %523 = vrot.lane.b32.xlu0 %v1294_v55, %s1165_s22  ;;  %1025 = vmatmul.msk.f32.vlgmr.msra.gmra.mxu2 %vm198_vm8, %v355_v31  ;;  %v655_v31 = vld [vmem:[%s1541_s4 + $0x10] sm:$0xff] }
 0x30d   :  { %677 = vmatpush.msra.mxu1 %v655_v31 }
 0x311   :  { %v271_v32 = vpop.xlane.xlu2 %270 }
 0x312   :  { %1076 = vrcp.f32 %v271_v32 }
 0x313   :  { %v522_v46 = vpop.permute.xlu1 %521 }
 0x318   :  { %v1077_v33 = vpop.eup %1076 }
 0x319   :  { %v277_v34 = vmul.f32 %v1077_v33, %v1073_v18  ;;  %v262_v35 = vpop.xlane.xlu2 %261 }
 0x31a   :  { %v264_v37 = vsub.f32 %v256_v21, %v262_v35 }
 0x31b   :  { %1020 = vmatmul.msk.f32.vlgmr.msra.gmra.mxu3 %vm198_vm8, %v277_v34 }
 0x31c   :  { %v267_v38 = vmul.f32 1.442695, %v264_v37 }
 0x31e   :  { %1078 = vpow2.f32 %v267_v38 }
 0x321   :  { %v437_v36 = vpop.permute.xlu2 %436 }
 0x322   :  { %457 = vmatpush.msra.mxu0 %v437_v36 }
 0x324   :  { %v1079_v40 = vpop.eup %1078 }
 0x325   :  { %v272_v41 = vsel %vm198_vm8, %v1079_v40, 0.0 }
 0x329   :  { %v690_v39 = vpop.permute.xlu2 %689 }
 0x32a   :  { %1040 = vmatpush.xpose.msk.msra.mxu2 %vm198_vm8, %v690_v39 }
 0x336   :  { %273 = vadd.xlane.f32.xlu0 %v272_v41 }
 0x34a   :  { %603 = vrot.lane.b32.xlu0 %v1310_v58, %s1165_s22 }
 0x352   :  { %717 = vrot.lane.b32.xlu0 %v1304_v57, %s1166_s23 }
 0x35a   :  { %715 = vrot.lane.b32.xlu0 %v1316_v60, %s1166_s23 }
 0x36b   :  { %v400_v42 = vpop.xlane.xlu0 %399 }
 0x36c   :  { %1080 = vrcp.f32 %v400_v42 }
 0x372   :  { %v1081_v43 = vpop.eup %1080 }
 0x373   :  { %v406_v44 = vmul.f32 %v1081_v43, %v1075_v27 }
 0x375   :  { %1026 = vmatmul.msk.f32.vlgmr.msrb.gmra.mxu3 %vm198_vm8, %v406_v44 }
 0x37e   :  { %v524_v45 = vpop.permute.xlu0 %523 }
 0x37f   :  { %1032 = vmatpush.xpose.msk.msra.mxu3 %vm198_vm8, %v524_v45 }
 0x382   :  { %1033 = vmatmul.msk.f32.vlgmr.msra.gmra.mxu3 %vm198_vm8, %v522_v46 }
 0x38f   :  { %v379_v47 = vpop.f32.mrf.mxu2 }
 0x390   :  { %v383_v48 = vmul.f32 0.35355338, %v379_v47 }
 0x392   :  { %v385_v49 = vsel %vm1322_vm9, %v383_v48, -inf }
 0x393   :  { %v389_v50 = vsel %vm198_vm8, %v385_v49, -inf }
 0x394   :  { %390 = vmax.xlane.f32.xlu1 %v389_v50 }
 0x39e   :  { %v299_v51 = vpop.f32.mrf.mxu3 }
 0x39f   :  { %1030 = vmatmul.msk.f32.vlgmr.msrb.gmra.mxu2 %vm198_vm8, %v299_v51 }
 0x3a9   :  { %v274_v52 = vpop.xlane.xlu0 %273 }
 0x3aa   :  { %1082 = vrcp.f32 %v274_v52 }
 0x3ad   :  { %551 = vrot.lane.b32.xlu1 %v1304_v57, %s1165_s22 }
 0x3b0   :  { %v1083_v53 = vpop.eup %1082 }
 0x3b1   :  { %v278_v54 = vmul.f32 %v1083_v53, %v1079_v40 }
 0x3b3   :  { %1021 = vmatmul.msk.f32.vlgmr.msrb.gmra.mxu0 %vm198_vm8, %v278_v54 }
 0x3bc   :  { %v604_v55 = vpop.permute.xlu0 %603 }
 0x3bd   :  { %624 = vmatpush.msrb.mxu3 %v604_v55 }
 0x3c4   :  { %v718_v61 = vpop.permute.xlu0 %717 }
 0x3c5   :  { %1042 = vmatpush.xpose.msk.msra.mxu3 %vm198_vm8, %v718_v61 }
 0x3f8   :  { %v432_v63 = vpop.f32.mrf.mxu3 }
 0x3f9   :  { %1028 = vmatmul.msk.f32.vlgmr.msrb.gmra.mxu1 %vm198_vm8, %v432_v63 }
 0x405   :  { %v546_v4 = vpop.f32.mrf.mxu3 }
 0x406   :  { %v577_v8 = vmul.f32 0.35355338, %v546_v4 }
 0x407   :  { %v391_v2 = vpop.xlane.xlu1 %390 }
 0x408   :  { %v393_v3 = vsub.f32 %v385_v49, %v391_v2  ;;  %v579_v9 = vsel %vm1322_vm9, %v577_v8, -inf }
 0x409   :  { %v581_v11 = vsel %vm198_vm8, %v579_v9, -inf }
 0x40a   :  { %v396_v57 = vmul.f32 1.442695, %v393_v3 }
 0x40c   :  { %1084 = vpow2.f32 %v396_v57  ;;  %v1058_v57 = vpack.i.bf16 %v1313_v59, %v1310_v58 }
 0x412   :  { %v1085_v6 = vpop.eup %1084 }
 0x413   :  { %v401_v7 = vsel %vm198_vm8, %v1085_v6, 0.0 }
 0x414   :  { %402 = vadd.xlane.f32.xlu2 %v401_v7 }
 0x41c   :  { %582 = vmax.xlane.f32.xlu2 %v581_v11 }
 0x41f   :  { %v552_v12 = vpop.permute.xlu1 %551 }
 0x420   :  { %1034 = vmatpush.xpose.msk.msrb.mxu0 %vm198_vm8, %v552_v12 }
 0x422   :  { %v1403_v32 = vpop.f32.mrf.mxu2 }
 0x430   :  { %v322_v13 = vpop.f32.mrf.mxu0 }
 0x431   :  { %1031 = vmatmul.msk.f32.gmra.mxu2 %vm198_vm8, %v322_v13 }
 0x434   :  { %549 = vrot.lane.b32.xlu2 %v1316_v60, %s1165_s22 }
 0x487   :  { %v403_v14 = vpop.xlane.xlu2 %402 }
 0x488   :  { %1086 = vrcp.f32 %v403_v14 }
 0x48e   :  { %v1087_v15 = vpop.eup %1086 }
 0x48f   :  { %v407_v16 = vmul.f32 %v1087_v15, %v1085_v6  ;;  %v583_v17 = vpop.xlane.xlu2 %582 }
 0x490   :  { %v587_v18 = vsub.f32 %v579_v9, %v583_v17  ;;  %v486_v17 = vpop.f32.mrf.mxu1 }
 0x491   :  { %1027 = vmatmul.msk.f32.vlgmr.msra.gmra.mxu0 %vm198_vm8, %v407_v16 }
 0x492   :  { %v589_v19 = vmul.f32 1.442695, %v587_v18 }
 0x494   :  { %1088 = vpow2.f32 %v589_v19 }
 0x497   :  { %v550_v20 = vpop.permute.xlu2 %549 }
 0x499   :  { %1035 = vmatmul.msk.f32.vlgmr.msrb.gmra.mxu0 %vm198_vm8, %v550_v20  ;;  %v516_v20 = vadd.f32 %v1403_v32, %v486_v17 }
 0x49a   :  { %v1089_v21 = vpop.eup %1088 }
 0x49b   :  { %v593_v22 = vsel %vm198_vm8, %v1089_v21, 0.0 }
 0x49c   :  { %594 = vadd.xlane.f32.xlu2 %v593_v22 }
 0x4b4   :  { %687 = vrot.lane.b32.xlu2 %v1300_v56, %s1166_s23  ;;  %v716_v56 = vpop.permute.xlu0 %715  ;;  %v1405_v36 = vpop.f32.mrf.mxu2 }
 0x50e   :  { %v459_v60 = vpop.f32.mrf.mxu0 }
 0x50f   :  { %1029 = vmatmul.msk.f32.gmra.mxu1 %vm198_vm8, %v459_v60  ;;  %v595_v23 = vpop.xlane.xlu2 %594 }
 0x510   :  { %1090 = vrcp.f32 %v595_v23  ;;  %v1063_v23 = vld [vmem:[%s1542_s5] ss:$0 sm:$0xff] }
 0x516   :  { %v1091_v24 = vpop.eup %1090  ;;  %v574_v25 = vpop.f32.mrf.mxu0 }
 0x517   :  { %v601_v26 = vmul.f32 %v1091_v24, %v1089_v21  ;;  %v578_v27 = vmul.f32 0.35355338, %v574_v25  ;;  %v688_v28 = vpop.permute.xlu2 %687 }
 0x518   :  { %1041 = vmatmul.msk.f32.vlgmr.msra.gmra.mxu2 %vm198_vm8, %v688_v28 }
 0x519   :  { %1036 = vmatmul.msk.f32.vlgmr.msrb.gmra.mxu3 %vm198_vm8, %v601_v26  ;;  %v580_v29 = vsel %vm1322_vm9, %v578_v27, -inf }
 0x51a   :  { %v584_v30 = vsel %vm198_vm8, %v580_v29, -inf }
 0x51b   :  { %585 = vmax.xlane.f32.xlu1 %v584_v30 }
 0x521   :  { %1043 = vmatmul.msk.f32.vlgmr.msra.gmra.mxu3 %vm198_vm8, %v716_v56 }
 0x58c   :  { %v489_v18 = vpop.f32.mrf.mxu1 }
 0x58d   :  { %v519_v28 = vadd.f32 %v1405_v36, %v489_v18 }
 0x58e   :  { %v586_v33 = vpop.xlane.xlu1 %585 }
 0x58f   :  { %v588_v34 = vsub.f32 %v580_v29, %v586_v33 }
 0x591   :  { %v591_v35 = vmul.f32 1.442695, %v588_v34 }
 0x593   :  { %1092 = vpow2.f32 %v591_v35 }
 0x599   :  { %v1093_v37 = vpop.eup %1092 }
 0x59a   :  { %v596_v38 = vsel %vm198_vm8, %v1093_v37, 0.0 }
 0x59b   :  { %597 = vadd.xlane.f32.xlu1 %v596_v38  ;;  %v712_v39 = vpop.f32.mrf.mxu2 }
 0x59c   :  { %v743_v40 = vmul.f32 0.35355338, %v712_v39  ;;  %v626_v41 = vpop.f32.mrf.mxu3 }
 0x59d   :  { %1038 = vmatmul.msk.f32.vlgmr.msra.gmra.mxu1 %vm198_vm8, %v626_v41 }
 0x59e   :  { %v745_v42 = vsel %vm1322_vm9, %v743_v40, -inf }
 0x59f   :  { %v747_v43 = vsel %vm198_vm8, %v745_v42, -inf }
 0x5a0   :  { %748 = vmax.xlane.f32.xlu2 %v747_v43  ;;  %v907_v43 = vld [vmem:[%s1543_s6 + $0x10] sm:$0xff] }
 0x5a4   :  { %v740_v44 = vpop.f32.mrf.mxu3 }
 0x5a5   :  { %v744_v45 = vmul.f32 0.35355338, %v740_v44  ;;  %v906_v44 = vld [vmem:[%s1543_s6 + $0x8] sm:$0xff] }
 0x5a7   :  { %v746_v46 = vsel %vm1322_vm9, %v744_v45, -inf  ;;  %v905_v45 = vld [vmem:[%s1543_s6] sm:$0xff] }
 0x5a8   :  { %v750_v47 = vsel %vm198_vm8, %v746_v46, -inf }
 0x5a9   :  { %751 = vmax.xlane.f32.xlu0 %v750_v47 }
 0x5bd   :  { %629 = vrot.lane.b32.xlu0 %v1313_v59, %s1165_s22  ;;  %v821_v59 = vld [vmem:[%s1541_s4 + $0x18] sm:$0xff] }
 0x5be   :  { %843 = vmatpush.msrb.mxu3 %v821_v59 }
 0x60e   :  { %v598_v5 = vpop.xlane.xlu1 %597 }
 0x613   :  { %v749_v48 = vpop.xlane.xlu2 %748 }
 0x614   :  { %v753_v49 = vsub.f32 %v745_v42, %v749_v48  ;;  %v908_v42 = vld [vmem:[%s1543_s6 + $0x18] sm:$0xff] }
 0x616   :  { %v755_v50 = vmul.f32 1.442695, %v753_v49  ;;  %v959_v49 = vld [vmem:[%s1545_s8 + $0x78] sm:$0xff] }
 0x617   :  { %964 = vmatpush.msrb.mxu1 %v959_v49 }
 0x618   :  { %1094 = vpow2.f32 %v755_v50  ;;  %v958_v50 = vld [vmem:[%s1545_s8 + $0x70] sm:$0xff] }
 0x619   :  { %965 = vmatpush.msrb.mxu1 %v958_v50 }
 0x61a   :  { %v679_v19 = vpop.f32.mrf.mxu1 }
 0x61b   :  { %v685_v21 = vadd.f32 %v679_v19, %v516_v20 }
 0x61c   :  { %v752_v51 = vpop.xlane.xlu0 %751 }
 0x61d   :  { %v754_v52 = vsub.f32 %v746_v46, %v752_v51  ;;  %v957_v51 = vld [vmem:[%s1545_s8 + $0x68] sm:$0xff] }
 0x61e   :  { %v1095_v53 = vpop.eup %1094  ;;  %966 = vmatpush.msrb.mxu1 %v957_v51 }
 0x61f   :  { %v757_v54 = vmul.f32 1.442695, %v754_v52  ;;  %v759_v55 = vsel %vm198_vm8, %v1095_v53, 0.0  ;;  %v956_v52 = vld [vmem:[%s1545_s8 + $0x60] sm:$0xff] }
 0x620   :  { %760 = vadd.xlane.f32.xlu2 %v759_v55  ;;  %v955_v55 = vld [vmem:[%s1545_s8 + $0x58] sm:$0xff]  ;;  %967 = vmatpush.msrb.mxu1 %v956_v52 }
 0x621   :  { %1096 = vpow2.f32 %v757_v54 }
 0x622   :  { %1098 = vrcp.f32 %v598_v5  ;;  %968 = vmatpush.msrb.mxu1 %v955_v55 }
 0x627   :  { %v1097_v61 = vpop.eup %1096 }
 0x628   :  { %v762_v62 = vsel %vm198_vm8, %v1097_v61, 0.0  ;;  %v1099_v63 = vpop.eup %1098 }
 0x629   :  { %763 = vadd.xlane.f32.xlu1 %v762_v62  ;;  %v602_v2 = vmul.f32 %v1099_v63, %v1093_v37  ;;  %v954_v63 = vld [vmem:[%s1545_s8 + $0x50] sm:$0xff] }
 0x62a   :  { %969 = vmatpush.msrb.mxu1 %v954_v63 }
 0x62f   :  { %v630_v3 = vpop.permute.xlu0 %629 }
 0x630   :  { %650 = vmatpush.msra.mxu0 %v630_v3 }
 0x631   :  { %1037 = vmatmul.msk.f32.vlgmr.msra.gmra.mxu0 %vm198_vm8, %v602_v2 }
 0x638   :  { %1059 = vrot.lane.b32.xlu2 %v1058_v57, %s1166_s23  ;;  %v953_v57 = vld [vmem:[%s1545_s8 + $0x48] sm:$0xff] }
 0x639   :  { %970 = vmatpush.msrb.mxu1 %v953_v57 }
 0x693   :  { %v761_v4 = vpop.xlane.xlu2 %760 }
 0x694   :  { %1100 = vrcp.f32 %v761_v4 }
 0x69a   :  { %v1101_v6 = vpop.eup %1100 }
 0x69b   :  { %v1060_v7 = vpop.permute.xlu2 %1059  ;;  %v767_v12 = vmul.f32 %v1101_v6, %v1095_v53  ;;  %v952_v6 = vld [vmem:[%s1545_s8 + $0x40] sm:$0xff] }
 0x69c   :  { %v1062_v8 = vunpack.i.h.bf16 %v1060_v7  ;;  %v1061_v9 = vunpack.i.l.bf16 %v1060_v7  ;;  %v764_v11 = vpop.xlane.xlu1 %763  ;;  %v951_v7 = vld [vmem:[%s1545_s8 + $0x38] sm:$0xff]  ;;  %971 = vmatpush.msrb.mxu1 %v952_v6 }
 0x69d   :  { %1102 = vrcp.f32 %v764_v11 }
 0x69e   :  { %790 = vmatpush.msrb.mxu0 %v1061_v9  ;;  %816 = vmatpush.msrb.mxu2 %v1062_v8  ;;  %v950_v9 = vld [vmem:[%s1545_s8 + $0x30] sm:$0xff] }
 0x69f   :  { %1044 = vmatmul.msk.f32.vlgmr.msrb.gmra.mxu0 %vm198_vm8, %v767_v12  ;;  %972 = vmatpush.msrb.mxu1 %v951_v7 }
 0x6a0   :  { %931 = vmatpush.msra.mxu0 %v908_v42 }
 0x6a1   :  { %973 = vmatpush.msrb.mxu1 %v950_v9 }
 0x6a2   :  { %932 = vmatpush.msra.mxu0 %v907_v43 }
 0x6a3   :  { %v1103_v13 = vpop.eup %1102 }
 0x6a4   :  { %v768_v14 = vmul.f32 %v1103_v13, %v1097_v61  ;;  %933 = vmatpush.msra.mxu0 %v906_v44  ;;  %v949_v13 = vld [vmem:[%s1545_s8 + $0x28] sm:$0xff] }
 0x6a5   :  { %974 = vmatpush.msrb.mxu1 %v949_v13 }
 0x6a6   :  { %1045 = vmatmul.msk.f32.vlgmr.msrb.gmra.mxu2 %vm198_vm8, %v768_v14  ;;  %934 = vmatpush.msra.mxu0 %v905_v45 }
 0x6ae   :  { %v652_v58 = vpop.f32.mrf.mxu0 }
 0x6af   :  { %1039 = vmatmul.msk.f32.gmra.mxu1 %vm198_vm8, %v652_v58  ;;  %v948_v58 = vld [vmem:[%s1545_s8 + $0x20] sm:$0xff] }
 0x6b0   :  { %975 = vmatpush.msrb.mxu1 %v948_v58 }
 0x71c   :  { %v792_v15 = vpop.f32.mrf.mxu0 }
 0x71d   :  { %1046 = vmatmul.msk.f32.vlgmr.msrb.gmra.mxu3 %vm198_vm8, %v792_v15  ;;  %v947_v15 = vld [vmem:[%s1545_s8 + $0x18] sm:$0xff] }
 0x71e   :  { %976 = vmatpush.msrb.mxu1 %v947_v15 }
 0x729   :  { %v818_v16 = vpop.f32.mrf.mxu2 }
 0x72a   :  { %1047 = vmatmul.msk.f32.gmra.mxu3 %vm198_vm8, %v818_v16 }
 0x72c   :  { %v682_v27 = vpop.f32.mrf.mxu1 }
 0x72d   :  { %v686_v29 = vadd.f32 %v682_v27, %v519_v28 }
 0x7a0   :  { %v845_v22 = vpop.f32.mrf.mxu3 }
 0x7a1   :  { %v851_v60 = vadd.f32 %v845_v22, %v685_v21  ;;  %v946_v21 = vld [vmem:[%s1545_s8 + $0x10] sm:$0xff]  ;;  %v945_v22 = vld [vmem:[%s1545_s8 + $0x8] sm:$0xff] }
 0x7a2   :  { %977 = vmatpush.msrb.mxu1 %v946_v21 }
 0x7a3   :  { %v853_v24 = vadd.f32 %v851_v60, %v1229_v0  ;;  %v944_v60 = vld [vmem:[%s1545_s8] sm:$0xff] }
 0x7a4   :  { %978 = vmatpush.msrb.mxu1 %v945_v22 }
 0x7a5   :  { %v1436_v25 = vadd.f32 %v1063_v23, %v853_v24 }
 0x7a6   :  { %979 = vmatpush.msrb.mxu1 %v944_v60 }
 0x7a7   :  { %v861_v26 = vsel %vm54_vm0, %v1436_v25, 0.0 }
 0x7a8   :  { %862 = vadd.xlane.f32.xlu1 %v861_v26 }
 0x7ad   :  { %v848_v30 = vpop.f32.mrf.mxu3 }
 0x7ae   :  { %v852_v56 = vadd.f32 %v848_v30, %v686_v29 }
 0x7b0   :  { %v854_v31 = vadd.f32 %v852_v56, %v1231_v1  ;;  %v1065_v56 = vld [vmem:[%s1546_s9] ss:$0 sm:$0xff] }
 0x7b2   :  { %v1442_v32 = vadd.f32 %v1063_v23, %v854_v31  ;;  %v1064_v23 = vld [vmem:[%s1544_s7] ss:$0 sm:$0xff]  ;;  %s1167_s7 = smov [#allocation5]  }
 0x7b3   :  { %s995_s8 = sshll.u32 %s1167_s7, 4  ;;  %s996_s8 = int_to_ptr.vmem [resolvable:$true] %s995_s8 }
 0x7b4   :  { %v864_v33 = vsel %vm54_vm0, %v1442_v32, 0.0 }
 0x7b5   :  { %865 = vadd.xlane.f32.xlu1 %v864_v33 }
 0x81b   :  { %v863_v0 = vpop.xlane.xlu1 %862 }
 0x81c   :  { %v867_v34 = vmul.f32 %v863_v0, %v1237_v10 }
 0x81e   :  { %v869_v35 = vsub.f32 %v1436_v25, %v867_v34 }
 0x820   :  { %v871_v37 = vmul.f32 %v869_v35, %v869_v35 }
 0x822   :  { %v873_v38 = vsel %vm54_vm0, %v871_v37, 0.0 }
 0x823   :  { %874 = vadd.xlane.f32.xlu0 %v873_v38 }
 0x828   :  { %v866_v36 = vpop.xlane.xlu1 %865 }
 0x829   :  { %v868_v39 = vmul.f32 %v866_v36, %v1237_v10 }
 0x82b   :  { %v1451_v1 = vsub.f32 %v1442_v32, %v868_v39 }
 0x82d   :  { %v872_v40 = vmul.f32 %v1451_v1, %v1451_v1 }
 0x82f   :  { %v876_v41 = vsel %vm54_vm0, %v872_v40, 0.0 }
 0x830   :  { %877 = vadd.xlane.f32.xlu1 %v876_v41 }
 0x896   :  { %v875_v46 = vpop.xlane.xlu0 %874 }
 0x897   :  { %v879_v47 = vmul.f32 %v875_v46, %v1237_v10 }
 0x899   :  { %v881_v48 = vadd.f32 1e-05, %v879_v47 }
 0x89b   :  { %1104 = vrsqrt.f32 %v881_v48  ;;  %vm889_vm11 = vweird.f32 %v881_v48 }
 0x8a1   :  { %v1105_v53 = vpop.eup %1104 }
 0x8a2   :  { %v884_v54 = vmul.f32 %v1105_v53, %v881_v48  ;;  %vm890_vm10 = vweird.f32 %v1105_v53 }
 0x8a3   :  { %v878_v5 = vpop.xlane.xlu1 %877  ;;  %vm891_vm12 = vmor %vm889_vm11, %vm890_vm10 }
 0x8a4   :  { %v885_v61 = vmul.f32 %v1105_v53, %v884_v54  ;;  %v880_v62 = vmul.f32 %v878_v5, %v1237_v10 }
 0x8a6   :  { %v886_v2 = vmul.f32 0.5, %v885_v61  ;;  %v882_v3 = vadd.f32 1e-05, %v880_v62 }
 0x8a8   :  { %v887_v4 = vsub.f32 1.5, %v886_v2  ;;  %1106 = vrsqrt.f32 %v882_v3  ;;  %vm899_vm14 = vweird.f32 %v882_v3 }
 0x8aa   :  { %v888_v10 = vmul.f32 %v1105_v53, %v887_v4 }
 0x8ac   :  { %v892_v8 = vsel %vm891_vm12, %v1105_v53, %v888_v10 }
 0x8ad   :  { %v903_v11 = vmul.f32 %v892_v8, %v869_v35 }
 0x8ae   :  { %v1107_v12 = vpop.eup %1106 }
 0x8af   :  { %v894_v14 = vmul.f32 %v1107_v12, %v882_v3  ;;  %1048 = vmatmul.msk.f32.vlgmr.msra.gmra.mxu0 %vm54_vm0, %v903_v11  ;;  %vm900_vm13 = vweird.f32 %v1107_v12 }
 0x8b0   :  { %vm901_vm15 = vmor %vm899_vm14, %vm900_vm13 }
 0x8b1   :  { %v895_v59 = vmul.f32 %v1107_v12, %v894_v14 }
 0x8b3   :  { %v896_v16 = vmul.f32 0.5, %v895_v59 }
 0x8b5   :  { %v897_v17 = vsub.f32 1.5, %v896_v16 }
 0x8b7   :  { %v898_v18 = vmul.f32 %v1107_v12, %v897_v17 }
 0x8b9   :  { %v902_v19 = vsel %vm901_vm15, %v1107_v12, %v898_v18 }
 0x8ba   :  { %v904_v20 = vmul.f32 %v902_v19, %v1451_v1 }
 0x8bc   :  { %1049 = vmatmul.msk.f32.gmra.mxu0 %vm54_vm0, %v904_v20 }
 0x92c   :  { %v936_v24 = vpop.f32.mrf.mxu0 }
 0x92d   :  { %v937_v26 = vadd.f32 %v1064_v23, %v936_v24 }
 0x92f   :  { %v942_v27 = vmax.f32 %v937_v26, 0.0 }
 0x931   :  { %980 = vmatmul.f32.vlgmr.msrb.gmra.mxu1 %v942_v27 }
 0x939   :  { %v939_v28 = vpop.f32.mrf.mxu0 }
 0x93a   :  { %v940_v29 = vadd.f32 %v1064_v23, %v939_v28 }
 0x93c   :  { %v943_v30 = vmax.f32 %v940_v29, 0.0 }
 0x93e   :  { %983 = vmatmul.f32.gmra.mxu1 %v943_v30 }
 0x9ae   :  { %v981_v31 = vpop.f32.mrf.mxu1 }
 0x9af   :  { %v982_v33 = vadd.f32 %v1065_v56, %v981_v31 }
 0x9b1   :  { %v987_v0 = vadd.f32 %v982_v33, %v1436_v25 }
 0x9b3   :  { %989 = vst.msk [vmem:[#allocation5] sm:$0xff] %vm54_vm0, %v987_v0 }
 0x9bb   :  { %v984_v34 = vpop.f32.mrf.mxu1 }
 0x9bc   :  { %v985_v35 = vadd.f32 %v1065_v56, %v984_v34 }
 0x9be   :  { %v988_v37 = vadd.f32 %v985_v35, %v1442_v32 }
 0x9c0   :  { %990 = vst.msk [vmem:[#allocation5 + $0x8] sm:$0xff] %vm54_vm0, %v988_v37 }
 0x9c1   :  { %1003 = dma.vmem_to_hbm [thread:$0]  %s996_s8, 256, %s998_s30, [#allocation4], %s1161_s18, %s1161_s18, %s1162_s19  }
 0x9c2   :  { %1158 = dma.done.wait [#allocation4], 256  }
 0x9c3   :  { %1159 = vsyncadd [#allocation4], 4294967040 }
 0x9c4   :  { %1008 = vsyncpa [#allocation3], 1 }
 0x9c5   :  { %1009 = vsyncpa [#allocation4], 1 }

</bundles_post_ra>
